<compile_context>
chip_gen: v6e
topology: v6e:2x2x1
jax: 0.10.0
libtpu: 0.0.40
codegen_flags: <defaults>
</compile_context>

<pallas_src>
import functools
import math

import jax
import jax.numpy as jnp
from jax.experimental import pallas as pl
from jax.experimental.pallas import tpu as pltpu


MAX_ROW_TILE = 512              # row tile for the (rows = batch*seq) kernels


def _default_vmem_limit():
    cap = 64 * 1024 * 1024                      # conservative fallback (v7x per-TC VMEM)
    try:
        cap = int(getattr(pltpu.get_tpu_info(), "vmem_capacity_bytes", cap))
    except Exception:
        pass
    # ~3/4 of physical: ~96 MiB on v5e/v6e (128 MiB), ~48 MiB on v7x (64 MiB)
    return int(min(100 * 1024 * 1024, (cap * 3) // 4))


VMEM_LIMIT = _default_vmem_limit()


def _params(semantics):
    return pltpu.CompilerParams(dimension_semantics=semantics,
                                vmem_limit_bytes=VMEM_LIMIT)


def _row_tile_for(m):
    """Largest row tile (multiple of 8, <= MAX_ROW_TILE) that divides m exactly."""
    assert m % 8 == 0, m
    t = min(MAX_ROW_TILE, m)
    while m % t:
        t -= 8
    return t


def _ln(z, gamma, beta, eps):
    """LayerNorm over the last dim; z is f32."""
    mean = jnp.mean(z, axis=-1, keepdims=True)
    var = jnp.mean(jnp.square(z - mean), axis=-1, keepdims=True)
    return (z - mean) * jax.lax.rsqrt(var + eps) * gamma + beta


_GELU_C0 = 0.7978845608028654            # sqrt(2/pi)
_GELU_C1 = _GELU_C0 * 0.044715


def _gelu_tanh(h):
    """tanh-approx GELU with a reduced VALU chain; tanh goes to the EUP."""
    t = jnp.tanh(h * (_GELU_C0 + _GELU_C1 * (h * h)))
    return h * (0.5 * t + 0.5)


# --------------------------------------------------------------------------
# Pallas kernels
# --------------------------------------------------------------------------
def _dense_kernel(x_ref, w_ref, b_ref, o_ref):
    y = jnp.dot(x_ref[...], w_ref[...], preferred_element_type=jnp.float32)
    o_ref[...] = (y + b_ref[...]).astype(o_ref.dtype)


def dense(x, w, b, out_dtype=jnp.bfloat16):
    """y = x @ w + b.  x: (M, K) bf16 with M % 8 == 0, w: (K, N) bf16, b: (N,) f32."""
    m, k = x.shape
    n = w.shape[1]
    tm = _row_tile_for(m)
    return pl.pallas_call(
        _dense_kernel,
        out_shape=jax.ShapeDtypeStruct((m, n), out_dtype),
        grid=(m // tm,),
        in_specs=[
            pl.BlockSpec((tm, k), lambda i: (i, 0)),
            pl.BlockSpec((k, n), lambda i: (0, 0)),
            pl.BlockSpec((1, n), lambda i: (0, 0)),
        ],
        out_specs=pl.BlockSpec((tm, n), lambda i: (i, 0)),
        compiler_params=_params(("parallel",)),
    )(x, w, b.reshape(1, n))


def _ln_kernel(x_ref, g_ref, b_ref, o_ref, *, eps):
    z = x_ref[...].astype(jnp.float32)
    o_ref[...] = _ln(z, g_ref[...], b_ref[...], eps).astype(o_ref.dtype)


def layernorm(x, gamma, beta, eps=1e-12, out_dtype=jnp.bfloat16):
    """LayerNorm(x) over the last dim (f32 internally)."""
    m, h = x.shape
    tm = _row_tile_for(m)
    return pl.pallas_call(
        functools.partial(_ln_kernel, eps=eps),
        out_shape=jax.ShapeDtypeStruct((m, h), out_dtype),
        grid=(m // tm,),
        in_specs=[
            pl.BlockSpec((tm, h), lambda i: (i, 0)),
            pl.BlockSpec((1, h), lambda i: (0, 0)),
            pl.BlockSpec((1, h), lambda i: (0, 0)),
        ],
        out_specs=pl.BlockSpec((tm, h), lambda i: (i, 0)),
        compiler_params=_params(("parallel",)),
    )(x, gamma.reshape(1, h), beta.reshape(1, h))


def _attn_block_kernel(q_ref, k_ref, v_ref, bias_ref, res_ref, wo_ref, bo_ref,
                       g_ref, bln_ref, o_ref, *, scale, eps):
    """One batch element, fully fused:
         per-head softmax(q k^T * scale + bias) v, output projection accumulated per head
         (sum_h ctx_h @ Wo[h] == merged-ctx @ Wo), + residual, LayerNorm,
         single lane-dense (1, S, H) store."""
    bias = bias_ref[0]                                    # (1, S) additive mask, f32
    acc = bo_ref[...] + res_ref[0].astype(jnp.float32)    # (S, H) f32: output bias + residual
    num_heads = q_ref.shape[1]
    for h in range(num_heads):                            # static unroll; one (S, S) live at a time
        qh = q_ref[0, h]                                  # (S, hd) bf16
        kh = k_ref[0, h]
        vh = v_ref[0, h]
        scores = jax.lax.dot_general(qh, kh, (((1,), (1,)), ((), ())),
                                     preferred_element_type=jnp.float32)   # q @ k^T, (S, S)
        scores = scores * scale + bias
        row_max = jnp.max(scores, axis=-1, keepdims=True)
        e = jnp.exp(scores - row_max)
        p = e * pl.reciprocal(jnp.sum(e, axis=-1, keepdims=True), approx=True)
        ctx_h = jnp.dot(p.astype(vh.dtype), vh, preferred_element_type=jnp.float32)
        acc = acc + jnp.dot(ctx_h.astype(wo_ref.dtype), wo_ref[h],
                            preferred_element_type=jnp.float32)
    o_ref[0] = _ln(acc, g_ref[...], bln_ref[...], eps).astype(o_ref.dtype)


def attention_block(q, k, v, attn_bias, residual, wo_heads, bo, ln_g, ln_b, eps=1e-12):
    """q, k, v: (BT, nh, S, hd) bf16; attn_bias: (BT, 1, S) f32; residual: (BT, S, H) bf16;
       wo_heads: (nh, hd, H) bf16 (row-split view of the (H, H) output projection)."""
    bt, nh, s, hd = q.shape
    hidden = nh * hd
    scale = 1.0 / math.sqrt(hd)
    return pl.pallas_call(
        functools.partial(_attn_block_kernel, scale=scale, eps=eps),
        out_shape=jax.ShapeDtypeStruct((bt, s, hidden), q.dtype),
        grid=(bt,),
        in_specs=[
            pl.BlockSpec((1, nh, s, hd), lambda b: (b, 0, 0, 0)),
            pl.BlockSpec((1, nh, s, hd), lambda b: (b, 0, 0, 0)),
            pl.BlockSpec((1, nh, s, hd), lambda b: (b, 0, 0, 0)),
            pl.BlockSpec((1, 1, s), lambda b: (b, 0, 0)),
            pl.BlockSpec((1, s, hidden), lambda b: (b, 0, 0)),
            pl.BlockSpec((nh, hd, hidden), lambda b: (0, 0, 0)),
            pl.BlockSpec((1, hidden), lambda b: (0, 0)),
            pl.BlockSpec((1, hidden), lambda b: (0, 0)),
            pl.BlockSpec((1, hidden), lambda b: (0, 0)),
        ],
        out_specs=pl.BlockSpec((1, s, hidden), lambda b: (b, 0, 0)),
        compiler_params=_params(("parallel",)),
    )(q, k, v, attn_bias, residual, wo_heads, bo.reshape(1, hidden),
      ln_g.reshape(1, hidden), ln_b.reshape(1, hidden))


def _ffn_addln_single_kernel(x_ref, w1_ref, b1_ref, w2_ref, b2_ref, g_ref, bln_ref, o_ref,
                             *, eps):
    """Fused FFN + residual + LayerNorm, full intermediate dim resident (no reduction axis)."""
    x = x_ref[...]
    h = jnp.dot(x, w1_ref[...], preferred_element_type=jnp.float32) + b1_ref[...]
    h = _gelu_tanh(h)
    y = jnp.dot(h.astype(w2_ref.dtype), w2_ref[...], preferred_element_type=jnp.float32)
    z = y + b2_ref[...] + x.astype(jnp.float32)
    o_ref[...] = _ln(z, g_ref[...], bln_ref[...], eps).astype(o_ref.dtype)


def _ffn_addln_tiled_kernel(x_ref, w1_ref, b1_ref, w2_ref, b2_ref, g_ref, bln_ref, o_ref,
                            acc_ref, *, eps):
    """Fallback for very large inter: inter tiled on the last grid axis, f32 accumulator."""
    kk = pl.program_id(1)

    @pl.when(kk == 0)
    def _():
        acc_ref[...] = jnp.zeros_like(acc_ref)

    h = jnp.dot(x_ref[...], w1_ref[...], preferred_element_type=jnp.float32) + b1_ref[...]
    h = _gelu_tanh(h)
    acc_ref[...] += jnp.dot(h.astype(w2_ref.dtype), w2_ref[...],
                            preferred_element_type=jnp.float32)

    @pl.when(kk == pl.num_programs(1) - 1)
    def _():
        z = acc_ref[...] + b2_ref[...] + x_ref[...].astype(jnp.float32)
        o_ref[...] = _ln(z, g_ref[...], bln_ref[...], eps).astype(o_ref.dtype)


def ffn_addln(x, w1, b1, w2, b2, ln_g, ln_b, eps=1e-12, out_dtype=jnp.bfloat16):
    """LayerNorm(x + (gelu(x @ w1 + b1) @ w2 + b2)); x: (M, H) bf16 with M % 8 == 0."""
    m, hidden = x.shape
    inter = w1.shape[1]
    tm = _row_tile_for(m)
    b1r = b1.reshape(1, inter)
    b2r = b2.reshape(1, hidden)
    gr = ln_g.reshape(1, hidden)
    br = ln_b.reshape(1, hidden)
    weight_bytes = 2 * hidden * inter * w1.dtype.itemsize       # W1 + W2 (bf16)
    if 2 * weight_bytes <= VMEM_LIMIT // 2:                     # x2 for double-buffering
        return pl.pallas_call(
            functools.partial(_ffn_addln_single_kernel, eps=eps),
            out_shape=jax.ShapeDtypeStruct((m, hidden), out_dtype),
            grid=(m // tm,),
            in_specs=[
                pl.BlockSpec((tm, hidden), lambda i: (i, 0)),
                pl.BlockSpec((hidden, inter), lambda i: (0, 0)),
                pl.BlockSpec((1, inter), lambda i: (0, 0)),
                pl.BlockSpec((inter, hidden), lambda i: (0, 0)),
                pl.BlockSpec((1, hidden), lambda i: (0, 0)),
                pl.BlockSpec((1, hidden), lambda i: (0, 0)),
                pl.BlockSpec((1, hidden), lambda i: (0, 0)),
            ],
            out_specs=pl.BlockSpec((tm, hidden), lambda i: (i, 0)),
            compiler_params=_params(("parallel",)),
        )(x, w1, b1r, w2, b2r, gr, br)

    # very large inter: tile the reduction axis (last grid axis), accumulate in f32 scratch
    ti = 512
    while ti > 128 and inter % ti:
        ti -= 128
    if inter % ti:
        ti = inter
    return pl.pallas_call(
        functools.partial(_ffn_addln_tiled_kernel, eps=eps),
        out_shape=jax.ShapeDtypeStruct((m, hidden), out_dtype),
        grid=(m // tm, inter // ti),
        in_specs=[
            pl.BlockSpec((tm, hidden), lambda i, kk: (i, 0)),
            pl.BlockSpec((hidden, ti), lambda i, kk: (0, kk)),
            pl.BlockSpec((1, ti), lambda i, kk: (0, kk)),
            pl.BlockSpec((ti, hidden), lambda i, kk: (kk, 0)),
            pl.BlockSpec((1, hidden), lambda i, kk: (0, 0)),
            pl.BlockSpec((1, hidden), lambda i, kk: (0, 0)),
            pl.BlockSpec((1, hidden), lambda i, kk: (0, 0)),
        ],
        out_specs=pl.BlockSpec((tm, hidden), lambda i, kk: (i, 0)),
        scratch_shapes=[pltpu.VMEM((tm, hidden), jnp.float32)],
        compiler_params=_params(("parallel", "arbitrary")),
    )(x, w1, b1r, w2, b2r, gr, br)


def _score_kernel(x_ref, w1_ref, b1_ref, w2_ref, b2_ref, o_ref):
    """Fused scoring head: sigmoid(tanh(x @ W1 + b1) . w2 + b2) (exact sigmoid)."""
    h = jnp.dot(x_ref[...], w1_ref[...], preferred_element_type=jnp.float32)
    h = jnp.tanh(h + b1_ref[...])
    # final Linear(H, 1) as VPU multiply + lane reduce (avoids a 1-column MXU matmul)
    logit = jnp.sum(h * w2_ref[...], axis=-1, keepdims=True) + b2_ref[...]
    o_ref[...] = (1.0 / (1.0 + jnp.exp(-logit))).astype(o_ref.dtype)


def score_head(cls_hidden, w1, b1, w2_row, b2):
    """cls_hidden: (M, H) bf16 -> scores (M, 1) f32."""
    m, hidden = cls_hidden.shape
    mp = ((m + 7) // 8) * 8
    xp = jnp.pad(cls_hidden, ((0, mp - m), (0, 0))) if mp != m else cls_hidden
    tm = _row_tile_for(mp)
    out = pl.pallas_call(
        _score_kernel,
        out_shape=jax.ShapeDtypeStruct((mp, 1), jnp.float32),
        grid=(mp // tm,),
        in_specs=[
            pl.BlockSpec((tm, hidden), lambda i: (i, 0)),
            pl.BlockSpec((hidden, hidden), lambda i: (0, 0)),
            pl.BlockSpec((1, hidden), lambda i: (0, 0)),
            pl.BlockSpec((1, hidden), lambda i: (0, 0)),
            pl.BlockSpec((1, 1), lambda i: (0, 0)),
        ],
        out_specs=pl.BlockSpec((tm, 1), lambda i: (i, 0)),
        compiler_params=_params(("parallel",)),
    )(xp, w1, b1.reshape(1, hidden), w2_row.reshape(1, hidden), b2.reshape(1, 1))
    return out[:m]


# --------------------------------------------------------------------------
# Model (glue in plain JAX, compute in the Pallas kernels above)
# --------------------------------------------------------------------------
def init_params(key, *, vocab, type_vocab, max_pos, hidden, inter, layers):
    keys = iter(jax.random.split(key, 8 + 8 * layers))

    def w(shape, scale=0.02, dtype=jnp.bfloat16):
        return (scale * jax.random.normal(next(keys), shape, jnp.float32)).astype(dtype)

    z = lambda shape: jnp.zeros(shape, jnp.float32)
    o = lambda shape: jnp.ones(shape, jnp.float32)

    params = {
        "word_emb": w((vocab, hidden), dtype=jnp.float32),
        "pos_emb": w((max_pos, hidden), dtype=jnp.float32),
        "type_emb": w((type_vocab, hidden), dtype=jnp.float32),
        "emb_ln_g": o((hidden,)),
        "emb_ln_b": z((hidden,)),
        "layers": [],
        # scoring head: Dropout -> Linear(H,H) -> Tanh -> Dropout -> Linear(H,1) -> Sigmoid
        "score_w1": w((hidden, hidden)),
        "score_b1": z((hidden,)),
        "score_w2": w((hidden,), dtype=jnp.float32),
        "score_b2": z((1,)),
    }
    for _ in range(layers):
        params["layers"].append({
            # fused QKV projection
            "wqkv": w((hidden, 3 * hidden)), "bqkv": z((3 * hidden,)),
            "wo": w((hidden, hidden)), "bo": z((hidden,)),
            "ln1_g": o((hidden,)), "ln1_b": z((hidden,)),
            "w_inter": w((hidden, inter)), "b_inter": z((inter,)),
            "w_out": w((inter, hidden)), "b_out": z((hidden,)),
            "ln2_g": o((hidden,)), "ln2_b": z((hidden,)),
        })
    return params


def bert_encoder(params, input_ids, token_type_ids, attention_mask, *, num_heads):
    """input_ids etc.: (BT, S) with BT * S a multiple of 8 (caller pads whole sequences)."""
    bt, s = input_ids.shape
    hidden = params["word_emb"].shape[1]
    assert hidden % num_heads == 0
    hd = hidden // num_heads
    m = bt * s

    # embeddings (gathers are XLA glue, f32) -> pure-LayerNorm kernel
    emb = (params["word_emb"][input_ids]
           + params["pos_emb"][:s][None, :, :]
           + params["type_emb"][token_type_ids])
    x = layernorm(emb.reshape(m, hidden), params["emb_ln_g"], params["emb_ln_b"])

    # additive attention mask, computed once per forward pass, reused by every layer
    attn_bias = ((1.0 - attention_mask.astype(jnp.float32)) * (-1e9)).reshape(bt, 1, s)

    def split_heads(t):   # (M, H) -> (BT, nh, S, hd); XLA glue (see TODO at top of file)
        return t.reshape(bt, s, num_heads, hd).transpose(0, 2, 1, 3)

    for lp in params["layers"]:
        qkv = dense(x, lp["wqkv"], lp["bqkv"])                     # fused QKV, (M, 3H) bf16
        q = split_heads(qkv[:, :hidden])
        k = split_heads(qkv[:, hidden:2 * hidden])
        v = split_heads(qkv[:, 2 * hidden:])
        wo_heads = lp["wo"].reshape(num_heads, hd, hidden)          # free reshape (row split)
        # attention + output projection + residual + LayerNorm in one fused kernel
        x = attention_block(q, k, v, attn_bias, x.reshape(bt, s, hidden),
                            wo_heads, lp["bo"], lp["ln1_g"], lp["ln1_b"]
                            ).reshape(m, hidden)
        # FFN + residual + LayerNorm in one fused kernel
        x = ffn_addln(x, lp["w_inter"], lp["b_inter"], lp["w_out"], lp["b_out"],
                      lp["ln2_g"], lp["ln2_b"])
    return x.reshape(bt, s, hidden)


def response_selector_forward(params, input_ids, token_type_ids, attention_mask,
                              labels=None, *, num_heads):
    """input_ids / token_type_ids / attention_mask: (B, num_sentences, S)."""
    b, n_sent, s = input_ids.shape
    bt = b * n_sent
    # fold the candidate-sentence loop into the batch: one encoder pass over B*N sequences
    ids = input_ids.reshape(bt, s)
    tt = token_type_ids.reshape(bt, s)
    am = attention_mask.reshape(bt, s)

    # pad whole sequences ONCE so every downstream row count is a multiple of 8
    seq_align = 8 // math.gcd(s, 8)
    bt_p = ((bt + seq_align - 1) // seq_align) * seq_align
    if bt_p != bt:
        pad = ((0, bt_p - bt), (0, 0))
        ids = jnp.pad(ids, pad)
        tt = jnp.pad(tt, pad)
        am = jnp.pad(am, pad)                 # mask=0 -> padded sequences fully masked

    seq_out = bert_encoder(params, ids, tt, am, num_heads=num_heads)   # (BT_p, S, H)
    cls_hidden = seq_out[:bt, 0, :]                                    # (BT, H)
    score = score_head(cls_hidden, params["score_w1"], params["score_b1"],
                       params["score_w2"], params["score_b2"])         # (BT, 1) f32
    all_score = score.reshape(b, n_sent)                               # (B, N)

    if labels is not None:
        y = labels.astype(jnp.float32)
        weight = 1.0 + 2.0 * y                    # torch.ones_like + 2*labels
        p = jnp.clip(all_score, 1e-7, 1.0 - 1e-7)
        bce = -(y * jnp.log(p) + (1.0 - y) * jnp.log(1.0 - p))
        loss = jnp.mean(weight * bce)             # F.binary_cross_entropy, mean reduction
    else:
        loss = None
    return all_score, loss


# --------------------------------------------------------------------------
if __name__ == "__main__":
    # small, module-consistent shapes (BERT-like, scaled down)
    B, N_SENT, S = 2, 3, 16                 # batch, candidate sentences, seq len
    HIDDEN, HEADS, LAYERS, INTER = 128, 4, 2, 256
    VOCAB, TYPE_VOCAB, MAX_POS = 100, 2, 64

    root = jax.random.PRNGKey(0)
    kp, ki, kt, kl = jax.random.split(root, 4)

    params = init_params(kp, vocab=VOCAB, type_vocab=TYPE_VOCAB, max_pos=MAX_POS,
                         hidden=HIDDEN, inter=INTER, layers=LAYERS)

    input_ids = jax.random.randint(ki, (B, N_SENT, S), 0, VOCAB, dtype=jnp.int32)
    token_type_ids = jax.random.randint(kt, (B, N_SENT, S), 0, TYPE_VOCAB, dtype=jnp.int32)
    attention_mask = jnp.ones((B, N_SENT, S), dtype=jnp.int32)
    # pad out the tail of the last candidate to exercise masking
    attention_mask = attention_mask.at[:, -1, S - 4:].set(0)
    labels = jax.random.bernoulli(kl, 0.5, (B, N_SENT)).astype(jnp.int32)

    scores, loss = response_selector_forward(
        params, input_ids, token_type_ids, attention_mask, labels, num_heads=HEADS)

    scores = jax.block_until_ready(scores)
    loss = jax.block_until_ready(loss)
    assert scores.shape == (B, N_SENT)
    assert bool(jnp.all((scores >= 0.0) & (scores <= 1.0)))
    assert bool(jnp.isfinite(loss))
    print("KERNEL_OK")
</pallas_src>

<mosaic_0001>
module attributes {stable_mosaic.version = 11 : i64} {
  func.func @_ln_kernel(%arg0: i32, %arg1: memref<96x128xf32, #tpu.memory_space<vmem>>, %arg2: memref<1x128xf32, #tpu.memory_space<vmem>>, %arg3: memref<1x128xf32, #tpu.memory_space<vmem>>, %arg4: memref<96x128xbf16, #tpu.memory_space<vmem>>) attributes {dimension_semantics = [#tpu.dimension_semantics<parallel>], iteration_bounds = array<i64: 1>, scalar_prefetch = 0 : i64, scratch_operands = 0 : i64, tpu.core_type = #tpu.core_type<tc>, window_params = [{transform_indices = @transform_0, window_bounds = array<i64: 96, 128>}, {pipeline_mode = #tpu.pipeline_mode<synchronous>, transform_indices = @transform_1, window_bounds = array<i64: 1, 128>}, {pipeline_mode = #tpu.pipeline_mode<synchronous>, transform_indices = @transform_2, window_bounds = array<i64: 1, 128>}, {transform_indices = @transform_3, window_bounds = array<i64: 96, 128>}]} {
    %c0 = arith.constant 0 : index
    %c0_0 = arith.constant 0 : index
    %0 = vector.load %arg1[%c0, %c0_0] : memref<96x128xf32, #tpu.memory_space<vmem>>, vector<96x128xf32>
    %c0_1 = arith.constant 0 : index
    %c0_2 = arith.constant 0 : index
    %1 = vector.load %arg2[%c0_1, %c0_2] : memref<1x128xf32, #tpu.memory_space<vmem>>, vector<1x128xf32>
    %c0_3 = arith.constant 0 : index
    %c0_4 = arith.constant 0 : index
    %2 = vector.load %arg3[%c0_3, %c0_4] : memref<1x128xf32, #tpu.memory_space<vmem>>, vector<1x128xf32>
    %cst = arith.constant dense<0.000000e+00> : vector<96xf32>
    %3 = vector.multi_reduction <add>, %0, %cst [1] : vector<96x128xf32> to vector<96xf32>
    %4 = vector.shape_cast %3 : vector<96xf32> to vector<96x1xf32>
    %cst_5 = arith.constant 1.280000e+02 : f32
    %5 = vector.broadcast %cst_5 : f32 to vector<96x1xf32>
    %6 = arith.divf %4, %5 : vector<96x1xf32>
    %7 = vector.broadcast %6 : vector<96x1xf32> to vector<96x128xf32>
    %8 = arith.subf %0, %7 : vector<96x128xf32>
    %9 = arith.mulf %8, %8 : vector<96x128xf32>
    %cst_6 = arith.constant dense<0.000000e+00> : vector<96xf32>
    %10 = vector.multi_reduction <add>, %9, %cst_6 [1] : vector<96x128xf32> to vector<96xf32>
    %11 = vector.shape_cast %10 : vector<96xf32> to vector<96x1xf32>
    %cst_7 = arith.constant 1.280000e+02 : f32
    %12 = vector.broadcast %cst_7 : f32 to vector<96x1xf32>
    %13 = arith.divf %11, %12 : vector<96x1xf32>
    %14 = vector.broadcast %6 : vector<96x1xf32> to vector<96x128xf32>
    %15 = arith.subf %0, %14 : vector<96x128xf32>
    %cst_8 = arith.constant 9.99999996E-13 : f32
    %16 = vector.broadcast %cst_8 : f32 to vector<96x1xf32>
    %17 = arith.addf %13, %16 : vector<96x1xf32>
    %18 = math.rsqrt %17 : vector<96x1xf32>
    %19 = vector.broadcast %18 : vector<96x1xf32> to vector<96x128xf32>
    %20 = arith.mulf %15, %19 : vector<96x128xf32>
    %21 = vector.broadcast %1 : vector<1x128xf32> to vector<96x128xf32>
    %22 = arith.mulf %20, %21 : vector<96x128xf32>
    %23 = vector.broadcast %2 : vector<1x128xf32> to vector<96x128xf32>
    %24 = arith.addf %22, %23 : vector<96x128xf32>
    %25 = arith.truncf %24 : vector<96x128xf32> to vector<96x128xbf16>
    %c0_9 = arith.constant 0 : index
    %c0_10 = arith.constant 0 : index
    %26 = vector.load %arg4[%c0_9, %c0_10] : memref<96x128xbf16, #tpu.memory_space<vmem>>, vector<96x128xbf16>
    tpu.vector_store %arg4[%c0_9, %c0_10], %25 {strides = array<i32>} : memref<96x128xbf16, #tpu.memory_space<vmem>>, vector<96x128xbf16>,
    return
  }
  func.func @transform_0(%arg0: i32) -> (i32, i32) {
    %c0_i32 = arith.constant 0 : i32
    %c0_i32_0 = arith.constant 0 : i32
    return %arg0, %c0_i32 : i32, i32
  }
  func.func @transform_1(%arg0: i32) -> (i32, i32) {
    %c0_i32 = arith.constant 0 : i32
    %c0_i32_0 = arith.constant 0 : i32
    %c0_i32_1 = arith.constant 0 : i32
    return %c0_i32, %c0_i32_0 : i32, i32
  }
  func.func @transform_2(%arg0: i32) -> (i32, i32) {
    %c0_i32 = arith.constant 0 : i32
    %c0_i32_0 = arith.constant 0 : i32
    %c0_i32_1 = arith.constant 0 : i32
    return %c0_i32, %c0_i32_0 : i32, i32
  }
  func.func @transform_3(%arg0: i32) -> (i32, i32) {
    %c0_i32 = arith.constant 0 : i32
    %c0_i32_0 = arith.constant 0 : i32
    return %arg0, %c0_i32 : i32, i32
  }
}

</mosaic_0001>

<bundles_post_ra>
// kernel: tpu_custom_call.1
= control target key start
LH: loop header
LB: loop body
LE: loop exit
PB: predicated region body
PF: predicated region fallthrough
CT: control target
= control target key end

     0   :  { %8 = vsyncpa [#allocation3], 0  ;;  %s550_s0 = inlined_call_operand.hbm [shape: f32[96,128], index: 0, kind: input, shape index: {}]   ;;  %s551_s1 = inlined_call_operand.vmem [shape: f32[1,128], index: 1, kind: input, shape index: {}]   ;;  %s552_s2 = inlined_call_operand.vmem [shape: f32[1,128], index: 2, kind: input, shape index: {}]   ;;  %s553_s3 = inlined_call_operand.hbm [shape: bf16[96,128], index: 3, kind: output, shape index: {}]  }
   0x1   :  { %9 = vsyncpa [#allocation4], 0  ;;  %s424_s12 = smov [#allocation2]  }
   0x2   :  { %s15_s13 = sshll.u32 %s424_s12, 4  ;;  %s16_s13 = int_to_ptr.vmem [resolvable:$true] %s15_s13 }
   0x3   :  { %s388_s14 = scalar_lea.vmem %s16_s13, 1536  ;;  %p393_p1 = scmp.lt.s32.totalorder %s16_s13, %s16_s13 }
   0x4   :  { %p389_p0 = scmp.ne.s32.totalorder %s16_s13, %s388_s14  ;;  %p394_p2 = scmp.lt.s32.totalorder %s388_s14, %s388_s14 }
   0x6   :  { %p395_p3 = por %p394_p2, %p393_p1 }
   0x8   :  { %p396_p4 = pnand %p395_p3, %p389_p0 }
   0xa   :  { %399 = shalt.err (!%p396_p4)
}
   0xb   :  { %s425_s15 = smov 128   ;;  %s426_s16 = smov 8  }
   0xc   :  { %21 = dma.hbm_to_vmem [thread:$0]  %s550_s0, 1536, %s16_s13, [#allocation3], %s425_s15, %s425_s15, %s426_s16  }
   0xd   :  { %420 = dma.done.wait [#allocation3], 1536  }
   0xe   :  { %421 = vsyncadd [#allocation3], 4294965760  ;;  %v29_v0 = vld [vmem:[#allocation2] sm:$0xff]  ;;  %v31_v1 = vld [vmem:[#allocation2 + $0x10] sm:$0xff] }
   0xf   :  { %43 = vadd.xlane.f32.xlu0 %v29_v0  ;;  %47 = vadd.xlane.f32.xlu1 %v31_v1  ;;  %v30_v2 = vld [vmem:[#allocation2 + $0x8] sm:$0xff]  ;;  %v32_v3 = vld [vmem:[#allocation2 + $0x18] sm:$0xff]  ;;  %v33_v4 = vld [vmem:[#allocation2 + $0x20] sm:$0xff] }
  0x10   :  { %v34_v5 = vld [vmem:[#allocation2 + $0x28] sm:$0xff]  ;;  %v35_v6 = vld [vmem:[#allocation2 + $0x30] sm:$0xff]  ;;  %v36_v7 = vld [vmem:[#allocation2 + $0x38] sm:$0xff] }
  0x11   :  { %v37_v8 = vld [vmem:[#allocation2 + $0x40] sm:$0xff]  ;;  %v38_v9 = vld [vmem:[#allocation2 + $0x48] sm:$0xff]  ;;  %v39_v10 = vld [vmem:[#allocation2 + $0x50] sm:$0xff] }
  0x12   :  { %v40_v11 = vld [vmem:[#allocation2 + $0x58] sm:$0xff] }
  0x13   :  { %45 = vadd.xlane.f32.xlu0 %v30_v2  ;;  %49 = vadd.xlane.f32.xlu1 %v32_v3 }
  0x17   :  { %51 = vadd.xlane.f32.xlu0 %v33_v4  ;;  %53 = vadd.xlane.f32.xlu1 %v34_v5 }
  0x1b   :  { %55 = vadd.xlane.f32.xlu0 %v35_v6  ;;  %57 = vadd.xlane.f32.xlu1 %v36_v7 }
  0x1f   :  { %59 = vadd.xlane.f32.xlu0 %v37_v8  ;;  %61 = vadd.xlane.f32.xlu1 %v38_v9 }
  0x23   :  { %63 = vadd.xlane.f32.xlu0 %v39_v10  ;;  %65 = vadd.xlane.f32.xlu1 %v40_v11 }
  0x98   :  { %v44_v12 = vpop.xlane.xlu0 %43  ;;  %v48_v13 = vpop.xlane.xlu1 %47 }
  0x99   :  { %v68_v14 = vmul.f32 0.0078125, %v44_v12  ;;  %v70_v15 = vmul.f32 0.0078125, %v48_v13 }
  0x9b   :  { %v453_v16 = vsub.f32 %v29_v0, %v68_v14  ;;  %v455_v17 = vsub.f32 %v31_v1, %v70_v15 }
  0x9c   :  { %v46_v18 = vpop.xlane.xlu0 %45  ;;  %v50_v19 = vpop.xlane.xlu1 %49 }
  0x9d   :  { %v69_v20 = vmul.f32 0.0078125, %v46_v18  ;;  %v92_v21 = vmul.f32 %v453_v16, %v453_v16  ;;  %v71_v22 = vmul.f32 0.0078125, %v50_v19  ;;  %v94_v25 = vmul.f32 %v455_v17, %v455_v17 }
  0x9f   :  { %v459_v23 = vsub.f32 %v30_v2, %v69_v20  ;;  %104 = vadd.xlane.f32.xlu0 %v92_v21  ;;  %v461_v24 = vsub.f32 %v32_v3, %v71_v22 }
  0xa0   :  { %v52_v26 = vpop.xlane.xlu0 %51  ;;  %v54_v27 = vpop.xlane.xlu1 %53 }
  0xa1   :  { %v72_v28 = vmul.f32 0.0078125, %v52_v26  ;;  %v93_v29 = vmul.f32 %v459_v23, %v459_v23  ;;  %v73_v30 = vmul.f32 0.0078125, %v54_v27  ;;  %v95_v33 = vmul.f32 %v461_v24, %v461_v24  ;;  %v504_v26 = vld [vmem:[%s551_s1] ss:$0 sm:$0xff]  ;;  %s427_s1 = smov [#allocation5]  }
  0xa3   :  { %v467_v31 = vsub.f32 %v33_v4, %v72_v28  ;;  %108 = vadd.xlane.f32.xlu0 %v94_v25  ;;  %106 = vadd.xlane.f32.xlu1 %v93_v29  ;;  %v469_v32 = vsub.f32 %v34_v5, %v73_v30 }
  0xa4   :  { %v56_v34 = vpop.xlane.xlu0 %55  ;;  %v58_v35 = vpop.xlane.xlu1 %57 }
  0xa5   :  { %v74_v36 = vmul.f32 0.0078125, %v56_v34  ;;  %v96_v37 = vmul.f32 %v467_v31, %v467_v31  ;;  %v75_v38 = vmul.f32 0.0078125, %v58_v35  ;;  %v97_v41 = vmul.f32 %v469_v32, %v469_v32 }
  0xa7   :  { %v475_v39 = vsub.f32 %v35_v6, %v74_v36  ;;  %110 = vadd.xlane.f32.xlu1 %v95_v33  ;;  %112 = vadd.xlane.f32.xlu0 %v96_v37  ;;  %v477_v40 = vsub.f32 %v36_v7, %v75_v38 }
  0xa8   :  { %v60_v42 = vpop.xlane.xlu0 %59  ;;  %v62_v43 = vpop.xlane.xlu1 %61 }
  0xa9   :  { %v76_v44 = vmul.f32 0.0078125, %v60_v42  ;;  %v98_v45 = vmul.f32 %v475_v39, %v475_v39  ;;  %v77_v46 = vmul.f32 0.0078125, %v62_v43  ;;  %v99_v49 = vmul.f32 %v477_v40, %v477_v40 }
  0xab   :  { %v483_v47 = vsub.f32 %v37_v8, %v76_v44  ;;  %114 = vadd.xlane.f32.xlu1 %v97_v41  ;;  %116 = vadd.xlane.f32.xlu0 %v98_v45  ;;  %v485_v48 = vsub.f32 %v38_v9, %v77_v46  ;;  %v511_v41 = vld [vmem:[%s552_s2] ss:$0 sm:$0xff]  ;;  %s277_s2 = sshll.u32 %s427_s1, 4  ;;  %s278_s2 = int_to_ptr.vmem [resolvable:$true] %s277_s2 }
  0xac   :  { %v64_v50 = vpop.xlane.xlu0 %63  ;;  %v66_v51 = vpop.xlane.xlu1 %65  ;;  %s400_s22 = scalar_lea.vmem %s278_s2, 768  ;;  %p405_p6 = scmp.lt.s32.totalorder %s278_s2, %s278_s2 }
  0xad   :  { %v78_v52 = vmul.f32 0.0078125, %v64_v50  ;;  %v100_v53 = vmul.f32 %v483_v47, %v483_v47  ;;  %v79_v54 = vmul.f32 0.0078125, %v66_v51  ;;  %v101_v57 = vmul.f32 %v485_v48, %v485_v48  ;;  %p401_p5 = scmp.ne.s32.totalorder %s278_s2, %s400_s22  ;;  %p406_p7 = scmp.lt.s32.totalorder %s400_s22, %s400_s22 }
  0xaf   :  { %v491_v55 = vsub.f32 %v39_v10, %v78_v52  ;;  %118 = vadd.xlane.f32.xlu1 %v99_v49  ;;  %120 = vadd.xlane.f32.xlu0 %v100_v53  ;;  %v493_v56 = vsub.f32 %v40_v11, %v79_v54  ;;  %p407_p8 = por %p406_p7, %p405_p6 }
  0xb1   :  { %v102_v58 = vmul.f32 %v491_v55, %v491_v55  ;;  %v103_v59 = vmul.f32 %v493_v56, %v493_v56  ;;  %p408_p9 = pnand %p407_p8, %p401_p5 }
  0xb3   :  { %122 = vadd.xlane.f32.xlu1 %v101_v57  ;;  %124 = vadd.xlane.f32.xlu0 %v102_v58 }
  0xb7   :  { %126 = vadd.xlane.f32.xlu1 %v103_v59 }
 0x128   :  { %v105_v60 = vpop.xlane.xlu0 %104 }
 0x129   :  { %v128_v61 = vmul.f32 0.0078125, %v105_v60 }
 0x12b   :  { %v140_v62 = vadd.f32 1e-12, %v128_v61 }
 0x12c   :  { %v107_v63 = vpop.xlane.xlu1 %106  ;;  %v109_v0 = vpop.xlane.xlu0 %108 }
 0x12d   :  { %356 = vrsqrt.f32 %v140_v62  ;;  %v129_v1 = vmul.f32 0.0078125, %v107_v63  ;;  %v130_v2 = vmul.f32 0.0078125, %v109_v0 }
 0x12f   :  { %v141_v3 = vadd.f32 1e-12, %v129_v1  ;;  %v142_v4 = vadd.f32 1e-12, %v130_v2 }
 0x130   :  { %v111_v5 = vpop.xlane.xlu1 %110  ;;  %v113_v6 = vpop.xlane.xlu0 %112 }
 0x131   :  { %358 = vrsqrt.f32 %v141_v3  ;;  %v131_v7 = vmul.f32 0.0078125, %v111_v5  ;;  %v132_v8 = vmul.f32 0.0078125, %v113_v6 }
 0x132   :  { %360 = vrsqrt.f32 %v142_v4 }
 0x133   :  { %v143_v9 = vadd.f32 1e-12, %v131_v7  ;;  %v144_v10 = vadd.f32 1e-12, %v132_v8 }
 0x134   :  { %v115_v11 = vpop.xlane.xlu1 %114  ;;  %v117_v12 = vpop.xlane.xlu0 %116 }
 0x135   :  { %362 = vrsqrt.f32 %v143_v9  ;;  %v133_v13 = vmul.f32 0.0078125, %v115_v11  ;;  %v134_v14 = vmul.f32 0.0078125, %v117_v12 }
 0x136   :  { %364 = vrsqrt.f32 %v144_v10 }
 0x137   :  { %v145_v15 = vadd.f32 1e-12, %v133_v13  ;;  %v146_v18 = vadd.f32 1e-12, %v134_v14 }
 0x138   :  { %v119_v19 = vpop.xlane.xlu1 %118  ;;  %v121_v20 = vpop.xlane.xlu0 %120 }
 0x139   :  { %366 = vrsqrt.f32 %v145_v15  ;;  %v135_v21 = vmul.f32 0.0078125, %v119_v19  ;;  %v136_v22 = vmul.f32 0.0078125, %v121_v20 }
 0x13a   :  { %v357_v25 = vpop.eup %356  ;;  %368 = vrsqrt.f32 %v146_v18 }
 0x13b   :  { %v164_v27 = vmul.f32 %v357_v25, %v453_v16  ;;  %v147_v28 = vadd.f32 1e-12, %v135_v21  ;;  %v148_v29 = vadd.f32 1e-12, %v136_v22 }
 0x13c   :  { %v123_v30 = vpop.xlane.xlu1 %122  ;;  %v125_v33 = vpop.xlane.xlu0 %124 }
 0x13d   :  { %370 = vrsqrt.f32 %v147_v28  ;;  %v137_v34 = vmul.f32 0.0078125, %v123_v30  ;;  %v138_v35 = vmul.f32 0.0078125, %v125_v33  ;;  %v182_v37 = vmul.f32 %v504_v26, %v164_v27 }
 0x13e   :  { %v359_v36 = vpop.eup %358  ;;  %372 = vrsqrt.f32 %v148_v29 }
 0x13f   :  { %v361_v38 = vpop.eup %360  ;;  %v165_v42 = vmul.f32 %v359_v36, %v459_v23  ;;  %v149_v16 = vadd.f32 1e-12, %v137_v34  ;;  %v150_v43 = vadd.f32 1e-12, %v138_v35  ;;  %v200_v51 = vadd.f32 %v511_v41, %v182_v37 }
 0x140   :  { %v166_v44 = vmul.f32 %v361_v38, %v455_v17  ;;  %v127_v45 = vpop.xlane.xlu1 %126 }
 0x141   :  { %v183_v46 = vmul.f32 %v504_v26, %v165_v42  ;;  %374 = vrsqrt.f32 %v149_v16  ;;  %v139_v49 = vmul.f32 0.0078125, %v127_v45 }
 0x142   :  { %v363_v50 = vpop.eup %362  ;;  %376 = vrsqrt.f32 %v150_v43  ;;  %v184_v54 = vmul.f32 %v504_v26, %v166_v44 }
 0x143   :  { %v365_v52 = vpop.eup %364  ;;  %v201_v53 = vadd.f32 %v511_v41, %v183_v46  ;;  %v167_v23 = vmul.f32 %v363_v50, %v461_v24  ;;  %v151_v57 = vadd.f32 1e-12, %v139_v49 }
 0x144   :  { %v168_v58 = vmul.f32 %v365_v52, %v467_v31  ;;  %v202_v62 = vadd.f32 %v511_v41, %v184_v54 }
 0x145   :  { %v318_v17 = vpack.c.bf16 %v201_v53, %v200_v51  ;;  %v185_v59 = vmul.f32 %v504_v26, %v167_v23  ;;  %378 = vrsqrt.f32 %v151_v57 }
 0x146   :  { %v367_v60 = vpop.eup %366  ;;  %v186_v0 = vmul.f32 %v504_v26, %v168_v58 }
 0x147   :  { %v369_v61 = vpop.eup %368  ;;  %319 = vst [vmem:[#allocation5] sm:$0xff] %v318_v17   ;;  %v203_v63 = vadd.f32 %v511_v41, %v185_v59  ;;  %v169_v1 = vmul.f32 %v367_v60, %v469_v32 }
 0x148   :  { %v170_v24 = vmul.f32 %v369_v61, %v475_v39  ;;  %v204_v5 = vadd.f32 %v511_v41, %v186_v0 }
 0x149   :  { %v323_v2 = vpack.c.bf16 %v203_v63, %v202_v62  ;;  %v187_v31 = vmul.f32 %v504_v26, %v169_v1 }
 0x14a   :  { %v371_v3 = vpop.eup %370  ;;  %v188_v7 = vmul.f32 %v504_v26, %v170_v24 }
 0x14b   :  { %v373_v4 = vpop.eup %372  ;;  %345 = vst [vmem:[#allocation5 + $0x8] sm:$0xff] %v323_v2   ;;  %v205_v6 = vadd.f32 %v511_v41, %v187_v31  ;;  %v171_v8 = vmul.f32 %v371_v3, %v477_v40 }
 0x14c   :  { %v172_v9 = vmul.f32 %v373_v4, %v483_v47  ;;  %v206_v12 = vadd.f32 %v511_v41, %v188_v7 }
 0x14d   :  { %v328_v10 = vpack.c.bf16 %v205_v6, %v204_v5  ;;  %v189_v32 = vmul.f32 %v504_v26, %v171_v8 }
 0x14e   :  { %v375_v39 = vpop.eup %374  ;;  %v190_v14 = vmul.f32 %v504_v26, %v172_v9 }
 0x14f   :  { %v377_v11 = vpop.eup %376  ;;  %346 = vst [vmem:[#allocation5 + $0x10] sm:$0xff] %v328_v10   ;;  %v207_v13 = vadd.f32 %v511_v41, %v189_v32  ;;  %v173_v15 = vmul.f32 %v375_v39, %v485_v48 }
 0x150   :  { %v174_v18 = vmul.f32 %v377_v11, %v491_v55  ;;  %v208_v20 = vadd.f32 %v511_v41, %v190_v14 }
 0x151   :  { %v333_v19 = vpack.c.bf16 %v207_v13, %v206_v12  ;;  %v191_v40 = vmul.f32 %v504_v26, %v173_v15 }
 0x152   :  { %v379_v47 = vpop.eup %378  ;;  %v192_v22 = vmul.f32 %v504_v26, %v174_v18 }
 0x153   :  { %347 = vst [vmem:[#allocation5 + $0x18] sm:$0xff] %v333_v19   ;;  %v209_v21 = vadd.f32 %v511_v41, %v191_v40  ;;  %v175_v25 = vmul.f32 %v379_v47, %v493_v56 }
 0x154   :  { %v210_v48 = vadd.f32 %v511_v41, %v192_v22 }
 0x155   :  { %v338_v27 = vpack.c.bf16 %v209_v21, %v208_v20  ;;  %v193_v28 = vmul.f32 %v504_v26, %v175_v25 }
 0x157   :  { %348 = vst [vmem:[#allocation5 + $0x20] sm:$0xff] %v338_v27   ;;  %v211_v55 = vadd.f32 %v511_v41, %v193_v28 }
 0x159   :  { %v343_v29 = vpack.c.bf16 %v211_v55, %v210_v48 }
 0x15b   :  { %349 = vst [vmem:[#allocation5 + $0x28] sm:$0xff] %v343_v29  }
 0x15c   :  { %411 = shalt.err (!%p408_p9)
}
 0x15d   :  { %s428_s23 = smov 64   ;;  %s429_s24 = smov 4  }
 0x15e   :  { %283 = dma.vmem_to_hbm [thread:$0]  %s278_s2, 768, %s553_s3, [#allocation4], %s428_s23, %s428_s23, %s429_s24  }
 0x15f   :  { %422 = dma.done.wait [#allocation4], 768  }
 0x160   :  { %423 = vsyncadd [#allocation4], 4294966528 }
 0x161   :  { %287 = vsyncpa [#allocation3], 1 }
 0x162   :  { %288 = vsyncpa [#allocation4], 1 }

</bundles_post_ra>
